<compile_context>
chip_gen: v5e
topology: v5e:2x2
jax: 0.10.0
libtpu: 0.0.40
codegen_flags: <defaults>
</compile_context>

<pallas_src>
import jax
import jax.numpy as jnp
from jax.experimental import pallas as pl
from jax.experimental.pallas import tpu as pltpu


def _round_up(x, m):
    return ((x + m - 1) // m) * m


# -----------------------------------------------------------------------------
# Fused sequence kernel: batched time-parallel projections + recurrent GRU loop
# -----------------------------------------------------------------------------
def decoder_seq_kernel(emb_ref, ctx_ref, h0_ref,
                       wih_e_ref, wih_c_ref, whh_ref, b_g_ref, bhh_n_ref,
                       wfc_e_ref, wfc_c_ref, wfc_h_ref, bfc_ref,
                       pred_ref, hout_ref, gi_scr):
    TB = emb_ref.shape[0]
    B, Hp = h0_ref.shape
    T = TB // B
    f32 = jnp.float32

    emb = emb_ref[...]                                      # (T*B, de)  bf16
    ctx = ctx_ref[...]                                      # (B, en)    bf16

    # ---- time-parallel phase: batched over all T steps ----------------------
    # Context / bias contributions are constant over T (biases folded in once).
    ctx_gi = jnp.dot(ctx, wih_c_ref[...], preferred_element_type=f32) + b_g_ref[...]   # (B, 3Hp)
    ctx_px = jnp.dot(ctx, wfc_c_ref[...], preferred_element_type=f32) + bfc_ref[...]   # (B, Vp)
    # Embedding contributions for every step in ONE MXU matmul each.
    gi_scr[...] = jnp.dot(emb, wih_e_ref[...], preferred_element_type=f32)    # (T*B, 3Hp)
    pred_ref[...] = jnp.dot(emb, wfc_e_ref[...], preferred_element_type=f32)  # (T*B, Vp) partial

    # Hoisted broadcast (JAX does not CSE broadcast_in_dim inside the loop).
    b_hh_n = jnp.broadcast_to(bhh_n_ref[...], (B, Hp))      # (B, Hp) f32

    # ---- recurrent phase: only the h-dependent matmuls remain ---------------
    def step(t, h):
        row = t * B
        if B % 8 == 0:                                      # sublane-aligned offsets
            row = pl.multiple_of(row, 8)
        gi = gi_scr[pl.ds(row, B), :] + ctx_gi              # (B, 3Hp) f32
        gh = jnp.dot(h.astype(whh_ref.dtype), whh_ref[...],
                     preferred_element_type=f32)            # (B, 3Hp) f32
        # PyTorch GRU gate order r, z, n; each slice is a full 128-lane block.
        r = jax.nn.sigmoid(gi[:, 0 * Hp:1 * Hp] + gh[:, 0 * Hp:1 * Hp])
        z = jax.nn.sigmoid(gi[:, 1 * Hp:2 * Hp] + gh[:, 1 * Hp:2 * Hp])
        n = jnp.tanh(gi[:, 2 * Hp:3 * Hp] + r * (gh[:, 2 * Hp:3 * Hp] + b_hh_n))
        h_new = (1.0 - z) * n + z * h                       # (B, Hp) f32

        # pred = cat(emb, h_new, ctx) @ W_fc + b_fc, accumulated in the output.
        pred_ref[pl.ds(row, B), :] = (
            pred_ref[pl.ds(row, B), :] + ctx_px
            + jnp.dot(h_new.astype(wfc_h_ref.dtype), wfc_h_ref[...],
                      preferred_element_type=f32))
        return h_new

    h_final = jax.lax.fori_loop(0, T, step, h0_ref[...], unroll=True)
    hout_ref[...] = h_final                                 # written once, after loop


# -----------------------------------------------------------------------------
# Wrappers
# -----------------------------------------------------------------------------
def decoder_decode_sequence(x_seq, hidden, context, pp, H, V):
    """x_seq: (T, B) int32 teacher-forced tokens, hidden: (1, B, H),
    context: (1, B, en) -> (preds (T, B, V), final hidden (1, B, H)).
    Equivalent to T successive Decoder.forward calls, in ONE pallas_call."""
    T, B = x_seq.shape
    Hp = pp["W_hh"].shape[0]
    Vp = pp["b_fc"].shape[1]
    wdt = pp["W_hh"].dtype

    # Embedding gather / cast / pad are cheap glue; all matmuls + gate math in Pallas.
    # TODO(synk): nn.Dropout skipped (eval-mode identity); training dropout would
    # need pltpu.prng_seed / prng_random_bits in-kernel.
    emb_flat = pp["embedding"][x_seq.reshape(-1)]            # (T*B, de), weight dtype
    ctx = context[0].astype(wdt)                             # (B, en)
    h0 = jnp.pad(hidden[0], ((0, 0), (0, Hp - H)))           # (B, Hp) f32, zero pad lanes

    vmem = pl.BlockSpec(memory_space=pltpu.MemorySpace.VMEM)
    inputs = (emb_flat, ctx, h0,
              pp["W_ih_e"], pp["W_ih_c"], pp["W_hh"], pp["b_gates"], pp["b_hh_n"],
              pp["W_fc_e"], pp["W_fc_c"], pp["W_fc_h"], pp["b_fc"])

    pred_flat, h_out = pl.pallas_call(
        decoder_seq_kernel,
        out_shape=(jax.ShapeDtypeStruct((T * B, Vp), jnp.float32),
                   jax.ShapeDtypeStruct((B, Hp), jnp.float32)),
        in_specs=[vmem] * len(inputs),
        out_specs=(vmem, vmem),
        scratch_shapes=[pltpu.VMEM((T * B, 3 * Hp), jnp.float32)],
    )(*inputs)

    preds = pred_flat.reshape(T, B, Vp)[:, :, :V]
    return preds, h_out[:, :H][None]


def decoder_forward(x, hidden, context, pp, H, V):
    """Exact Decoder.forward semantics (seq_len = 1): x (B,) int32,
    hidden (1,B,H), context (1,B,en) -> (pred (B,V), hidden (1,B,H))."""
    preds, h_new = decoder_decode_sequence(x[None, :], hidden, context, pp, H, V)
    return preds[0], h_new


# -----------------------------------------------------------------------------
# Parameters: natural shapes + one-time padded / split / bf16 kernel layout
# -----------------------------------------------------------------------------
def make_params(key, vocab, en_dim, de_dim, hidden):
    ks = jax.random.split(key, 7)
    s = 0.1
    return {
        "embedding": s * jax.random.normal(ks[0], (vocab, de_dim), jnp.float32),
        "W_ih": s * jax.random.normal(ks[1], (de_dim + en_dim, 3 * hidden), jnp.float32),
        "W_hh": s * jax.random.normal(ks[2], (hidden, 3 * hidden), jnp.float32),
        "b_ih": s * jax.random.normal(ks[3], (1, 3 * hidden), jnp.float32),
        "b_hh": s * jax.random.normal(ks[4], (1, 3 * hidden), jnp.float32),
        # fc rows ordered [de | H | en] to match cat(embedded, hidden, context)
        "W_fc": s * jax.random.normal(ks[5], (de_dim + hidden + en_dim, vocab), jnp.float32),
        "b_fc": s * jax.random.normal(ks[6], (1, vocab), jnp.float32),
    }


def _pad_cols(a, new_cols):
    return jnp.pad(a, ((0, 0), (0, new_cols - a.shape[1])))


def _pad_rows(a, new_rows):
    return jnp.pad(a, ((0, new_rows - a.shape[0]), (0, 0)))


def _pad_gates(w, H, Hp):
    """(K, 3H) -> (K, 3Hp): each r/z/n gate block starts on a 128-lane boundary;
    padded columns are zero so padded hidden lanes stay exactly 0."""
    return jnp.concatenate(
        [_pad_cols(w[:, g * H:(g + 1) * H], Hp) for g in range(3)], axis=1)


def prepare_padded_params(p, de, en, H, V, weight_dtype=jnp.bfloat16):
    """One-time repack of natural params into the lane-dense kernel layout.
    MXU-side weights are stored in `weight_dtype` (bf16 default: halves weight
    DMA/VMEM, native MXU bf16 rate on all generations); biases stay f32 since
    they are only touched by f32 VPU adds.  Pass jnp.float32 for strict parity."""
    Hp = _round_up(H, 128)
    Vp = _round_up(V, 128)
    W_ih, W_hh, b_ih, b_hh = p["W_ih"], p["W_hh"], p["b_ih"], p["b_hh"]
    W_fc, b_fc = p["W_fc"], p["b_fc"]

    # Fold b_hh's r/z blocks into b_ih (added before sigmoid in PyTorch's GRU);
    # only b_hh's n-block stays separate because it is multiplied by r.
    b_fold = jnp.concatenate([b_ih[:, :2 * H] + b_hh[:, :2 * H], b_ih[:, 2 * H:]], axis=1)

    return {
        "embedding": p["embedding"].astype(weight_dtype),
        "W_ih_e": _pad_gates(W_ih[:de], H, Hp).astype(weight_dtype),             # (de, 3Hp)
        "W_ih_c": _pad_gates(W_ih[de:], H, Hp).astype(weight_dtype),             # (en, 3Hp)
        "W_hh": _pad_rows(_pad_gates(W_hh, H, Hp), Hp).astype(weight_dtype),     # (Hp, 3Hp)
        "b_gates": _pad_gates(b_fold, H, Hp),                                    # (1, 3Hp) f32
        "b_hh_n": _pad_cols(b_hh[:, 2 * H:], Hp),                                # (1, Hp)  f32
        # fc rows [de | H | en] match cat(embedded, hidden, context).
        "W_fc_e": _pad_cols(W_fc[:de], Vp).astype(weight_dtype),                 # (de, Vp)
        "W_fc_h": _pad_rows(_pad_cols(W_fc[de:de + H], Vp), Hp).astype(weight_dtype),  # (Hp, Vp)
        "W_fc_c": _pad_cols(W_fc[de + H:], Vp).astype(weight_dtype),             # (en, Vp)
        "b_fc": _pad_cols(b_fc, Vp),                                             # (1, Vp)  f32
    }


# -----------------------------------------------------------------------------
# Pure-JAX reference (mirrors the PyTorch forward) for correctness checks
# -----------------------------------------------------------------------------
def decoder_reference(x, hidden, context, p, H):
    emb = p["embedding"][x]
    ctx = context[0]
    h = hidden[0]
    xcat = jnp.concatenate([emb, ctx], axis=1)
    gi = xcat @ p["W_ih"] + p["b_ih"]
    gh = h @ p["W_hh"] + p["b_hh"]
    r = jax.nn.sigmoid(gi[:, :H] + gh[:, :H])
    z = jax.nn.sigmoid(gi[:, H:2 * H] + gh[:, H:2 * H])
    n = jnp.tanh(gi[:, 2 * H:] + r * gh[:, 2 * H:])
    h_new = (1.0 - z) * n + z * h
    out = jnp.concatenate([emb, h_new, ctx], axis=1)
    pred = out @ p["W_fc"] + p["b_fc"]
    return pred, h_new[None]


if __name__ == "__main__":
    vocab_size, en_dim, de_dim, hidden_dim = 64, 16, 16, 32
    batch, T = 8, 6   # batch kept a multiple of 8 for aligned sublane slicing

    key = jax.random.PRNGKey(0)
    k_p, k_x, k_h, k_c, k_xs = jax.random.split(key, 5)

    params = make_params(k_p, vocab_size, en_dim, de_dim, hidden_dim)
    pp = prepare_padded_params(params, de_dim, en_dim, hidden_dim, vocab_size)

    x = jax.random.randint(k_x, (batch,), 0, vocab_size, dtype=jnp.int32)
    hidden = jax.random.normal(k_h, (1, batch, hidden_dim), jnp.float32)
    context = jax.random.normal(k_c, (1, batch, en_dim), jnp.float32)

    # bf16 MXU path (~3 decimal digits) vs the f32 reference -> loosened tolerance.
    TOL = dict(atol=3e-2, rtol=3e-2)

    # --- single step (exact module forward) ---------------------------------
    pred, h_new = decoder_forward(x, hidden, context, pp, hidden_dim, vocab_size)
    jax.block_until_ready((pred, h_new))

    pred_ref, h_ref = decoder_reference(x, hidden, context, params, hidden_dim)
    assert pred.shape == (batch, vocab_size) and h_new.shape == (1, batch, hidden_dim)
    assert jnp.allclose(pred, pred_ref, **TOL)
    assert jnp.allclose(h_new, h_ref, **TOL)

    # --- fused T-step decode (one pallas_call, one batched input projection) -
    x_seq = jax.random.randint(k_xs, (T, batch), 0, vocab_size, dtype=jnp.int32)
    preds_seq, h_final = decoder_decode_sequence(x_seq, hidden, context, pp,
                                                 hidden_dim, vocab_size)
    jax.block_until_ready((preds_seq, h_final))

    h_r = hidden
    preds_r = []
    for t in range(T):
        p_t, h_r = decoder_reference(x_seq[t], h_r, context, params, hidden_dim)
        preds_r.append(p_t)
    preds_r = jnp.stack(preds_r)
    assert preds_seq.shape == (T, batch, vocab_size)
    assert h_final.shape == (1, batch, hidden_dim)
    assert jnp.allclose(preds_seq, preds_r, **TOL)
    assert jnp.allclose(h_final, h_r, **TOL)

    print("KERNEL_OK")
</pallas_src>

<mosaic_0001>
module attributes {stable_mosaic.version = 11 : i64} {
  func.func @decoder_seq_kernel(%arg0: memref<8x16xbf16, #tpu.memory_space<vmem>>, %arg1: memref<8x16xbf16, #tpu.memory_space<vmem>>, %arg2: memref<8x128xf32, #tpu.memory_space<vmem>>, %arg3: memref<16x384xbf16, #tpu.memory_space<vmem>>, %arg4: memref<16x384xbf16, #tpu.memory_space<vmem>>, %arg5: memref<128x384xbf16, #tpu.memory_space<vmem>>, %arg6: memref<1x384xf32, #tpu.memory_space<vmem>>, %arg7: memref<1x128xf32, #tpu.memory_space<vmem>>, %arg8: memref<16x128xbf16, #tpu.memory_space<vmem>>, %arg9: memref<16x128xbf16, #tpu.memory_space<vmem>>, %arg10: memref<128x128xbf16, #tpu.memory_space<vmem>>, %arg11: memref<1x128xf32, #tpu.memory_space<vmem>>, %arg12: memref<8x128xf32, #tpu.memory_space<vmem>>, %arg13: memref<8x128xf32, #tpu.memory_space<vmem>>, %arg14: memref<8x384xf32, #tpu.memory_space<vmem>>) attributes {dimension_semantics = [], scalar_prefetch = 0 : i64, scratch_operands = 1 : i64, tpu.core_type = #tpu.core_type<tc>} {
    %c0 = arith.constant 0 : index
    %c0_0 = arith.constant 0 : index
    %0 = vector.load %arg0[%c0, %c0_0] : memref<8x16xbf16, #tpu.memory_space<vmem>>, vector<8x16xbf16>
    %c0_1 = arith.constant 0 : index
    %c0_2 = arith.constant 0 : index
    %1 = vector.load %arg1[%c0_1, %c0_2] : memref<8x16xbf16, #tpu.memory_space<vmem>>, vector<8x16xbf16>
    %c0_3 = arith.constant 0 : index
    %c0_4 = arith.constant 0 : index
    %2 = vector.load %arg4[%c0_3, %c0_4] : memref<16x384xbf16, #tpu.memory_space<vmem>>, vector<16x384xbf16>
    %cst = arith.constant dense<0.000000e+00> : vector<8x384xf32>
    %3 = tpu.matmul %1, %2, %cst {dimension_numbers = #tpu.dot_dimension_numbers<[1], [0], [0], [1], [0, 0, 1, 1], [], []>} : vector<8x16xbf16>, vector<16x384xbf16>, vector<8x384xf32> -> vector<8x384xf32>
    %c0_5 = arith.constant 0 : index
    %c0_6 = arith.constant 0 : index
    %4 = vector.load %arg6[%c0_5, %c0_6] : memref<1x384xf32, #tpu.memory_space<vmem>>, vector<1x384xf32>
    %5 = vector.broadcast %4 : vector<1x384xf32> to vector<8x384xf32>
    %6 = arith.addf %3, %5 : vector<8x384xf32>
    %c0_7 = arith.constant 0 : index
    %c0_8 = arith.constant 0 : index
    %7 = vector.load %arg9[%c0_7, %c0_8] : memref<16x128xbf16, #tpu.memory_space<vmem>>, vector<16x128xbf16>
    %cst_9 = arith.constant dense<0.000000e+00> : vector<8x128xf32>
    %8 = tpu.matmul %1, %7, %cst_9 {dimension_numbers = #tpu.dot_dimension_numbers<[1], [0], [0], [1], [0, 0, 1, 1], [], []>} : vector<8x16xbf16>, vector<16x128xbf16>, vector<8x128xf32> -> vector<8x128xf32>
    %c0_10 = arith.constant 0 : index
    %c0_11 = arith.constant 0 : index
    %9 = vector.load %arg11[%c0_10, %c0_11] : memref<1x128xf32, #tpu.memory_space<vmem>>, vector<1x128xf32>
    %10 = vector.broadcast %9 : vector<1x128xf32> to vector<8x128xf32>
    %11 = arith.addf %8, %10 : vector<8x128xf32>
    %c0_12 = arith.constant 0 : index
    %c0_13 = arith.constant 0 : index
    %12 = vector.load %arg3[%c0_12, %c0_13] : memref<16x384xbf16, #tpu.memory_space<vmem>>, vector<16x384xbf16>
    %cst_14 = arith.constant dense<0.000000e+00> : vector<8x384xf32>
    %13 = tpu.matmul %0, %12, %cst_14 {dimension_numbers = #tpu.dot_dimension_numbers<[1], [0], [0], [1], [0, 0, 1, 1], [], []>} : vector<8x16xbf16>, vector<16x384xbf16>, vector<8x384xf32> -> vector<8x384xf32>
    %c0_15 = arith.constant 0 : index
    %c0_16 = arith.constant 0 : index
    %14 = vector.load %arg14[%c0_15, %c0_16] : memref<8x384xf32, #tpu.memory_space<vmem>>, vector<8x384xf32>
    tpu.vector_store %arg14[%c0_15, %c0_16], %13 {strides = array<i32>} : memref<8x384xf32, #tpu.memory_space<vmem>>, vector<8x384xf32>,
    %c0_17 = arith.constant 0 : index
    %c0_18 = arith.constant 0 : index
    %15 = vector.load %arg8[%c0_17, %c0_18] : memref<16x128xbf16, #tpu.memory_space<vmem>>, vector<16x128xbf16>
    %cst_19 = arith.constant dense<0.000000e+00> : vector<8x128xf32>
    %16 = tpu.matmul %0, %15, %cst_19 {dimension_numbers = #tpu.dot_dimension_numbers<[1], [0], [0], [1], [0, 0, 1, 1], [], []>} : vector<8x16xbf16>, vector<16x128xbf16>, vector<8x128xf32> -> vector<8x128xf32>
    %c0_20 = arith.constant 0 : index
    %c0_21 = arith.constant 0 : index
    %17 = vector.load %arg12[%c0_20, %c0_21] : memref<8x128xf32, #tpu.memory_space<vmem>>, vector<8x128xf32>
    tpu.vector_store %arg12[%c0_20, %c0_21], %16 {strides = array<i32>} : memref<8x128xf32, #tpu.memory_space<vmem>>, vector<8x128xf32>,
    %c0_22 = arith.constant 0 : index
    %c0_23 = arith.constant 0 : index
    %18 = vector.load %arg7[%c0_22, %c0_23] : memref<1x128xf32, #tpu.memory_space<vmem>>, vector<1x128xf32>
    %19 = vector.shape_cast %18 : vector<1x128xf32> to vector<1x128xf32>
    %20 = vector.broadcast %19 : vector<1x128xf32> to vector<8x128xf32>
    %c0_24 = arith.constant 0 : index
    %c0_25 = arith.constant 0 : index
    %21 = vector.load %arg2[%c0_24, %c0_25] : memref<8x128xf32, #tpu.memory_space<vmem>>, vector<8x128xf32>
    %c0_i32 = arith.constant 0 : i32
    %c8_i32 = arith.constant 8 : i32
    %22 = arith.muli %c0_i32, %c8_i32 : i32
    %23 = tpu.assume_multiple %22, 8 : i32
    %24 = arith.index_cast %23 : i32 to index
    %c0_26 = arith.constant 0 : index
    %25 = vector.load %arg14[%24, %c0_26] : memref<8x384xf32, #tpu.memory_space<vmem>>, vector<8x384xf32>
    %26 = arith.addf %25, %6 : vector<8x384xf32>
    %27 = arith.truncf %21 : vector<8x128xf32> to vector<8x128xbf16>
    %c0_27 = arith.constant 0 : index
    %c0_28 = arith.constant 0 : index
    %28 = vector.load %arg5[%c0_27, %c0_28] : memref<128x384xbf16, #tpu.memory_space<vmem>>, vector<128x384xbf16>
    %cst_29 = arith.constant dense<0.000000e+00> : vector<8x384xf32>
    %29 = tpu.matmul %27, %28, %cst_29 {dimension_numbers = #tpu.dot_dimension_numbers<[1], [0], [0], [1], [0, 0, 1, 1], [], []>} : vector<8x128xbf16>, vector<128x384xbf16>, vector<8x384xf32> -> vector<8x384xf32>
    %30 = vector.extract_strided_slice %26 {offsets = [0, 0], sizes = [8, 128], strides = [1, 1]} : vector<8x384xf32> to vector<8x128xf32>
    %31 = vector.extract_strided_slice %29 {offsets = [0, 0], sizes = [8, 128], strides = [1, 1]} : vector<8x384xf32> to vector<8x128xf32>
    %32 = arith.addf %30, %31 : vector<8x128xf32>
    %33 = arith.negf %32 : vector<8x128xf32>
    %34 = math.exp %33 : vector<8x128xf32>
    %cst_30 = arith.constant 1.000000e+00 : f32
    %35 = vector.broadcast %cst_30 : f32 to vector<8x128xf32>
    %36 = arith.addf %35, %34 : vector<8x128xf32>
    %37 = arith.divf %35, %36 : vector<8x128xf32>
    %38 = vector.extract_strided_slice %26 {offsets = [0, 128], sizes = [8, 128], strides = [1, 1]} : vector<8x384xf32> to vector<8x128xf32>
    %39 = vector.extract_strided_slice %29 {offsets = [0, 128], sizes = [8, 128], strides = [1, 1]} : vector<8x384xf32> to vector<8x128xf32>
    %40 = arith.addf %38, %39 : vector<8x128xf32>
    %41 = arith.negf %40 : vector<8x128xf32>
    %42 = math.exp %41 : vector<8x128xf32>
    %cst_31 = arith.constant 1.000000e+00 : f32
    %43 = vector.broadcast %cst_31 : f32 to vector<8x128xf32>
    %44 = arith.addf %43, %42 : vector<8x128xf32>
    %45 = arith.divf %43, %44 : vector<8x128xf32>
    %46 = vector.extract_strided_slice %26 {offsets = [0, 256], sizes = [8, 128], strides = [1, 1]} : vector<8x384xf32> to vector<8x128xf32>
    %47 = vector.extract_strided_slice %29 {offsets = [0, 256], sizes = [8, 128], strides = [1, 1]} : vector<8x384xf32> to vector<8x128xf32>
    %48 = arith.addf %47, %20 : vector<8x128xf32>
    %49 = arith.mulf %37, %48 : vector<8x128xf32>
    %50 = arith.addf %46, %49 : vector<8x128xf32>
    %51 = math.tanh %50 : vector<8x128xf32>
    %cst_32 = arith.constant 1.000000e+00 : f32
    %52 = vector.broadcast %cst_32 : f32 to vector<8x128xf32>
    %53 = arith.subf %52, %45 : vector<8x128xf32>
    %54 = arith.mulf %53, %51 : vector<8x128xf32>
    %55 = arith.mulf %45, %21 : vector<8x128xf32>
    %56 = arith.addf %54, %55 : vector<8x128xf32>
    %57 = arith.index_cast %23 : i32 to index
    %c0_33 = arith.constant 0 : index
    %58 = vector.load %arg12[%57, %c0_33] : memref<8x128xf32, #tpu.memory_space<vmem>>, vector<8x128xf32>
    %59 = arith.addf %58, %11 : vector<8x128xf32>
    %60 = arith.truncf %56 : vector<8x128xf32> to vector<8x128xbf16>
    %c0_34 = arith.constant 0 : index
    %c0_35 = arith.constant 0 : index
    %61 = vector.load %arg10[%c0_34, %c0_35] : memref<128x128xbf16, #tpu.memory_space<vmem>>, vector<128x128xbf16>
    %cst_36 = arith.constant dense<0.000000e+00> : vector<8x128xf32>
    %62 = tpu.matmul %60, %61, %cst_36 {dimension_numbers = #tpu.dot_dimension_numbers<[1], [0], [0], [1], [0, 0, 1, 1], [], []>} : vector<8x128xbf16>, vector<128x128xbf16>, vector<8x128xf32> -> vector<8x128xf32>
    %63 = arith.addf %59, %62 : vector<8x128xf32>
    %64 = arith.index_cast %23 : i32 to index
    %c0_37 = arith.constant 0 : index
    %65 = vector.load %arg12[%64, %c0_37] : memref<8x128xf32, #tpu.memory_space<vmem>>, vector<8x128xf32>
    tpu.vector_store %arg12[%64, %c0_37], %63 {strides = array<i32>} : memref<8x128xf32, #tpu.memory_space<vmem>>, vector<8x128xf32>,
    %c1_i32 = arith.constant 1 : i32
    %c0_38 = arith.constant 0 : index
    %c0_39 = arith.constant 0 : index
    %66 = vector.load %arg13[%c0_38, %c0_39] : memref<8x128xf32, #tpu.memory_space<vmem>>, vector<8x128xf32>
    tpu.vector_store %arg13[%c0_38, %c0_39], %56 {strides = array<i32>} : memref<8x128xf32, #tpu.memory_space<vmem>>, vector<8x128xf32>,
    return
  }
}

</mosaic_0001>

<bundles_post_ra>
// kernel: tpu_custom_call.1
= control target key start
LH: loop header
LB: loop body
LE: loop exit
PB: predicated region body
PF: predicated region fallthrough
CT: control target
= control target key end

     0   :  { %19 = vsyncpa [#allocation4], 0  ;;  %s1467_s0 = inlined_call_operand.hbm [shape: bf16[8,16], index: 0, kind: input, shape index: {}]   ;;  %s1468_s1 = inlined_call_operand.hbm [shape: bf16[8,16], index: 1, kind: input, shape index: {}]   ;;  %s1469_s2 = inlined_call_operand.hbm [shape: f32[8,128], index: 2, kind: input, shape index: {}]   ;;  %s1470_s3 = inlined_call_operand.hbm [shape: bf16[16,384], index: 3, kind: input, shape index: {}]   ;;  %s1471_s4 = inlined_call_operand.hbm [shape: bf16[16,384], index: 4, kind: input, shape index: {}]   ;;  %s1472_s5 = inlined_call_operand.hbm [shape: bf16[128,384], index: 5, kind: input, shape index: {}]   ;;  %s1473_s6 = inlined_call_operand.hbm [shape: f32[1,384], index: 6, kind: input, shape index: {}]   ;;  %s1474_s7 = inlined_call_operand.hbm [shape: f32[1,128], index: 7, kind: input, shape index: {}]   ;;  %s1475_s8 = inlined_call_operand.hbm [shape: bf16[16,128], index: 8, kind: input, shape index: {}]   ;;  %s1476_s9 = inlined_call_operand.vmem [shape: bf16[16,128], index: 9, kind: input, shape index: {}]   ;;  %s1477_s10 = inlined_call_operand.hbm [shape: bf16[128,128], index: 10, kind: input, shape index: {}]   ;;  %s1478_s11 = inlined_call_operand.vmem [shape: f32[1,128], index: 11, kind: input, shape index: {}]   ;;  %s1479_s12 = inlined_call_operand.hbm [shape: f32[8,128], index: 12, kind: output, shape index: {0}]   ;;  %s1480_s13 = inlined_call_operand.hbm [shape: f32[8,128], index: 13, kind: output, shape index: {1}]  }
   0x1   :  { %20 = vsyncpa [#allocation7], 0 }
   0x2   :  { %21 = vsyncpa [#allocation10], 0 }
   0x3   :  { %22 = vsyncpa [#allocation13], 0 }
   0x4   :  { %23 = vsyncpa [#allocation16], 0 }
   0x5   :  { %24 = vsyncpa [#allocation19], 0 }
   0x6   :  { %25 = vsyncpa [#allocation5], 0  ;;  %s43_s27 = sshll.u32 %s1468_s1, 4  ;;  %s44_s27 = int_to_ptr.hbm [resolvable:$true] %s43_s27 }
   0x7   :  { %26 = vsyncpa [#allocation22], 0  ;;  %s1302_s28 = smov [#allocation6]   ;;  %s64_s15 = sshll.u32 %s1470_s3, 4  ;;  %s65_s15 = int_to_ptr.hbm [resolvable:$true] %s64_s15 }
   0x8   :  { %s45_s29 = sshll.u32 %s1302_s28, 4  ;;  %s1303_s16 = smov [#allocation9]   ;;  %s46_s29 = int_to_ptr.vmem [resolvable:$true] %s45_s29 }
   0x9   :  { %48 = dma.hbm_to_vmem [thread:$0]  %s44_s27, 64, %s46_s29, [#allocation7]  }
   0xa   :  { %s66_s17 = sshll.u32 %s1303_s16, 4  ;;  %s1304_s18 = smov 192   ;;  %s67_s17 = int_to_ptr.vmem [resolvable:$true] %s66_s17 }
   0xb   :  { %s1305_s19 = smov 12   ;;  %s90_s21 = sshll.u32 %s1472_s5, 4  ;;  %s91_s21 = int_to_ptr.hbm [resolvable:$true] %s90_s21 }
   0xc   :  { %72 = dma.hbm_to_vmem [thread:$0]  %s65_s15, 384, %s67_s17, [#allocation10], %s1304_s18, %s1304_s18, %s1305_s19  }
   0xd   :  { %s1306_s22 = smov [#allocation12]   ;;  %s115_s25 = sshll.u32 %s1474_s7, 4  ;;  %s116_s25 = int_to_ptr.hbm [resolvable:$true] %s115_s25 }
   0xe   :  { %s92_s23 = sshll.u32 %s1306_s22, 4  ;;  %s1307_s26 = smov [#allocation15]   ;;  %s93_s23 = int_to_ptr.vmem [resolvable:$true] %s92_s23 }
   0xf   :  { %98 = dma.hbm_to_vmem [thread:$0]  %s91_s21, 3072, %s93_s23, [#allocation13], %s1304_s18, %s1304_s18, %s1305_s19  }
  0x10   :  { %s117_s27 = sshll.u32 %s1307_s26, 4  ;;  %s32_s30 = sshll.u32 %s1467_s0, 4  ;;  %s118_s27 = int_to_ptr.vmem [resolvable:$true] %s117_s27  ;;  %s33_s30 = int_to_ptr.hbm [resolvable:$true] %s32_s30 }
  0x11   :  { %120 = dma.hbm_to_vmem [thread:$0]  %s116_s25, 16, %s118_s27, [#allocation16]  }
  0x12   :  { %s54_s15 = sshll.u32 %s1469_s2, 4  ;;  %s1308_s16 = smov [#allocation3]   ;;  %s55_s15 = int_to_ptr.hbm [resolvable:$true] %s54_s15 }
  0x13   :  { %s34_s7 = sshll.u32 %s1308_s16, 4  ;;  %s1309_s17 = smov [#allocation8]   ;;  %s35_s7 = int_to_ptr.vmem [resolvable:$true] %s34_s7 }
  0x14   :  { %37 = dma.hbm_to_vmem [thread:$0]  %s33_s30, 64, %s35_s7, [#allocation4]  }
  0x15   :  { %s56_s1 = sshll.u32 %s1309_s17, 4  ;;  %s77_s22 = sshll.u32 %s1471_s4, 4  ;;  %s57_s1 = int_to_ptr.vmem [resolvable:$true] %s56_s1  ;;  %s78_s22 = int_to_ptr.hbm [resolvable:$true] %s77_s22 }
  0x16   :  { %59 = dma.hbm_to_vmem [thread:$0]  %s55_s15, 128, %s57_s1, [#allocation7]  }
  0x17   :  { %s104_s3 = sshll.u32 %s1473_s6, 4  ;;  %s1310_s24 = smov [#allocation11]   ;;  %s105_s3 = int_to_ptr.hbm [resolvable:$true] %s104_s3 }
  0x18   :  { %s79_s2 = sshll.u32 %s1310_s24, 4  ;;  %s1311_s25 = smov [#allocation14]   ;;  %s80_s2 = int_to_ptr.vmem [resolvable:$true] %s79_s2 }
  0x19   :  { %85 = dma.hbm_to_vmem [thread:$0]  %s78_s22, 384, %s80_s2, [#allocation10], %s1304_s18, %s1304_s18, %s1305_s19  }
  0x1a   :  { %s106_s26 = sshll.u32 %s1311_s25, 4  ;;  %s125_s4 = sshll.u32 %s1475_s8, 4  ;;  %s107_s26 = int_to_ptr.vmem [resolvable:$true] %s106_s26  ;;  %s126_s4 = int_to_ptr.hbm [resolvable:$true] %s125_s4 }
  0x1b   :  { %109 = dma.hbm_to_vmem [thread:$0]  %s105_s3, 48, %s107_s26, [#allocation13]  }
  0x1c   :  { %s1312_s29 = smov [#allocation17]   ;;  %s140_s14 = sshll.u32 %s1477_s10, 4  ;;  %s141_s14 = int_to_ptr.hbm [resolvable:$true] %s140_s14 }
  0x1d   :  { %s127_s30 = sshll.u32 %s1312_s29, 4  ;;  %s1313_s15 = smov 64   ;;  %s128_s30 = int_to_ptr.vmem [resolvable:$true] %s127_s30 }
  0x1e   :  { %s1314_s16 = smov 4   ;;  %s1315_s18 = smov [#allocation18]  }
  0x1f   :  { %133 = dma.hbm_to_vmem [thread:$0]  %s126_s4, 128, %s128_s30, [#allocation16], %s1313_s15, %s1313_s15, %s1314_s16  }
  0x20   :  { %s142_s19 = sshll.u32 %s1315_s18, 4  ;;  %s143_s19 = int_to_ptr.vmem [resolvable:$true] %s142_s19 }
  0x21   :  { %148 = dma.hbm_to_vmem [thread:$0]  %s141_s14, 1024, %s143_s19, [#allocation19], %s1313_s15, %s1313_s15, %s1314_s16  }
  0x22   :  { %1286 = dma.done.wait [#allocation4], 64  }
  0x23   :  { %1287 = vsyncadd [#allocation4], 4294967232 }
  0x24   :  { %1288 = dma.done.wait [#allocation7], 192  }
  0x25   :  { %1289 = vsyncadd [#allocation7], 4294967104 }
  0x26   :  { %1290 = dma.done.wait [#allocation10], 768  }
  0x27   :  { %1291 = vsyncadd [#allocation10], 4294966528 }
  0x28   :  { %1292 = dma.done.wait [#allocation13], 3120  }
  0x29   :  { %1293 = vsyncadd [#allocation13], 4294964176 }
  0x2a   :  { %1294 = dma.done.wait [#allocation16], 144  }
  0x2b   :  { %1295 = vsyncadd [#allocation16], 4294967152 }
  0x2c   :  { %1296 = dma.done.wait [#allocation19], 1024  }
  0x2d   :  { %1297 = vsyncadd [#allocation19], 4294966272  ;;  %vm222_vm0 = vcmask 130048   ;;  %v762_v0 = vld [vmem:[#allocation11] sm:$0xf]  ;;  %s740_s20 = sshll.u32 %s1480_s13, 4  ;;  %s741_s20 = int_to_ptr.hbm [resolvable:$true] %s740_s20 }
  0x2e   :  { %v931_v1 = vld [vmem:[#allocation11 + $0x8] sm:$0xf0]  ;;  %v930_v2 = vld [vmem:[#allocation11 + $0x4] sm:$0xf]  ;;  %v764_v4 = vld [vmem:[#allocation11 + $0xc] sm:$0xf0] }
  0x2f   :  { %v763_v3 = vor.u32 %v931_v1, %v762_v0  ;;  %v1427_v5 = vld [vmem:[#allocation6] sm:$0xf]  ;;  %v782_v6 = vld [vmem:[#allocation9] sm:$0xf]  ;;  %v767_v7 = vor.u32 %v930_v2, %v764_v4  ;;  %v935_v8 = vld [vmem:[#allocation9 + $0x8] sm:$0xf0] }
  0x30   :  { %v934_v9 = vld [vmem:[#allocation9 + $0x4] sm:$0xf]  ;;  %v784_v10 = vld [vmem:[#allocation9 + $0xc] sm:$0xf0]  ;;  %v783_v11 = vor.u32 %v935_v8, %v782_v6  ;;  %v886_v13 = vld [vmem:[#allocation12 + $0xa8] sm:$0xf] }
  0x31   :  { %233 = vmatpush.bf16.msra.mxu0 %v763_v3  ;;  %v787_v12 = vor.u32 %v934_v9, %v784_v10  ;;  %v960_v14 = vld [vmem:[#allocation12 + $0xb0] sm:$0xf0]  ;;  %v959_v15 = vld [vmem:[#allocation12 + $0xac] sm:$0xf]  ;;  %246 = vmatpush.bf16.msra.mxu1 %v767_v7  ;;  %v888_v17 = vld [vmem:[#allocation12 + $0xb4] sm:$0xf0] }
  0x32   :  { %v887_v16 = vor.u32 %v960_v14, %v886_v13  ;;  %v770_v18 = vld [vmem:[#allocation11 + $0x8] sm:$0xf]  ;;  %v932_v19 = vld [vmem:[#allocation11 + $0x10] sm:$0xf0]  ;;  %v891_v20 = vor.u32 %v959_v15, %v888_v17  ;;  %v956_v24 = vld [vmem:[#allocation12 + $0x94] sm:$0xf] }
  0x33   :  { %v771_v21 = vor.u32 %v932_v19, %v770_v18  ;;  %v874_v22 = vld [vmem:[#allocation12 + $0x90] sm:$0xf]  ;;  %v957_v23 = vld [vmem:[#allocation12 + $0x98] sm:$0xf0]  ;;  %v876_v25 = vld [vmem:[#allocation12 + $0x9c] sm:$0xf0] }
  0x34   :  { %772 = vmatmul.msk.bf16.vlgmr.msra.gmra.mxu0 %vm222_vm0, %v1427_v5  ;;  %773 = vmatmul.msk.bf16.vlgmr.msra.gmra.mxu1 %vm222_vm0, %v1427_v5  ;;  %v875_v26 = vor.u32 %v957_v23, %v874_v22  ;;  %v862_v27 = vld [vmem:[#allocation12 + $0x78] sm:$0xf]  ;;  %v879_v28 = vor.u32 %v956_v24, %v876_v25  ;;  %v954_v29 = vld [vmem:[#allocation12 + $0x80] sm:$0xf0]  ;;  %v953_v30 = vld [vmem:[#allocation12 + $0x7c] sm:$0xf] }
  0x35   :  { %320 = vmatpush.bf16.msrb.mxu0 %v783_v11  ;;  %333 = vmatpush.bf16.msrb.mxu1 %v787_v12  ;;  %v864_v31 = vld [vmem:[#allocation12 + $0x84] sm:$0xf0]  ;;  %v790_v32 = vld [vmem:[#allocation9 + $0x8] sm:$0xf]  ;;  %v936_v33 = vld [vmem:[#allocation9 + $0x10] sm:$0xf0]  ;;  %v863_v37 = vor.u32 %v954_v29, %v862_v27 }
  0x36   :  { %259 = vmatpush.bf16.msra.mxu2 %v771_v21  ;;  %v894_v34 = vld [vmem:[#allocation12 + $0xb0] sm:$0xf]  ;;  %v791_v35 = vor.u32 %v936_v33, %v790_v32  ;;  %v961_v36 = vld [vmem:[#allocation12 + $0xb8] sm:$0xf0]  ;;  %v850_v38 = vld [vmem:[#allocation12 + $0x60] sm:$0xf]  ;;  %v867_v40 = vor.u32 %v953_v30, %v864_v31 }
  0x37   :  { %v895_v39 = vor.u32 %v961_v36, %v894_v34  ;;  %v951_v41 = vld [vmem:[#allocation12 + $0x68] sm:$0xf0]  ;;  %v882_v42 = vld [vmem:[#allocation12 + $0x98] sm:$0xf]  ;;  %v958_v43 = vld [vmem:[#allocation12 + $0xa0] sm:$0xf0] }
  0x38   :  { %v950_v44 = vld [vmem:[#allocation12 + $0x64] sm:$0xf]  ;;  %v852_v45 = vld [vmem:[#allocation12 + $0x6c] sm:$0xf0]  ;;  %v883_v46 = vor.u32 %v958_v43, %v882_v42  ;;  %v870_v47 = vld [vmem:[#allocation12 + $0x80] sm:$0xf]  ;;  %v851_v49 = vor.u32 %v951_v41, %v850_v38 }
  0x39   :  { %552 = vmatpush.bf16.msra.mxu0 %v887_v16  ;;  %565 = vmatpush.bf16.msra.mxu1 %v891_v20  ;;  %v955_v48 = vld [vmem:[#allocation12 + $0x88] sm:$0xf0]  ;;  %v855_v50 = vor.u32 %v950_v44, %v852_v45  ;;  %v838_v51 = vld [vmem:[#allocation12 + $0x48] sm:$0xf]  ;;  %v948_v52 = vld [vmem:[#allocation12 + $0x50] sm:$0xf0] }
  0x3a   :  { %774 = vmatmul.msk.bf16.vlgmr.msra.gmra.mxu2 %vm222_vm0, %v1427_v5  ;;  %v947_v53 = vld [vmem:[#allocation12 + $0x4c] sm:$0xf]  ;;  %v840_v54 = vld [vmem:[#allocation12 + $0x54] sm:$0xf0]  ;;  %v871_v55 = vor.u32 %v955_v48, %v870_v47  ;;  %v858_v56 = vld [vmem:[#allocation12 + $0x68] sm:$0xf]  ;;  %v839_v59 = vor.u32 %v948_v52, %v838_v51 }
  0x3b   :  { %346 = vmatpush.bf16.msrb.mxu2 %v791_v35  ;;  %v952_v57 = vld [vmem:[#allocation12 + $0x70] sm:$0xf0]  ;;  %v1435_v58 = vld [vmem:[#allocation3] sm:$0xf]  ;;  %v843_v60 = vor.u32 %v947_v53, %v840_v54  ;;  %v826_v61 = vld [vmem:[#allocation12 + $0x30] sm:$0xf] }
  0x3c   :  { %v945_v62 = vld [vmem:[#allocation12 + $0x38] sm:$0xf0]  ;;  %v944_v63 = vld [vmem:[#allocation12 + $0x34] sm:$0xf]  ;;  %v828_v0 = vld [vmem:[#allocation12 + $0x3c] sm:$0xf0]  ;;  %v859_v1 = vor.u32 %v952_v57, %v858_v56 }
  0x3d   :  { %553 = vmatpush.bf16.msra.mxu0 %v875_v26  ;;  %566 = vmatpush.bf16.msra.mxu1 %v879_v28  ;;  %v846_v2 = vld [vmem:[#allocation12 + $0x50] sm:$0xf]  ;;  %v949_v3 = vld [vmem:[#allocation12 + $0x58] sm:$0xf0]  ;;  %v827_v4 = vor.u32 %v945_v62, %v826_v61  ;;  %v831_v6 = vor.u32 %v944_v63, %v828_v0  ;;  %v814_v7 = vld [vmem:[#allocation12 + $0x18] sm:$0xf] }
  0x3e   :  { %v942_v8 = vld [vmem:[#allocation12 + $0x20] sm:$0xf0]  ;;  %v941_v9 = vld [vmem:[#allocation12 + $0x1c] sm:$0xf]  ;;  %v816_v10 = vld [vmem:[#allocation12 + $0x24] sm:$0xf0]  ;;  %v847_v11 = vor.u32 %v949_v3, %v846_v2 }
  0x3f   :  { %578 = vmatpush.bf16.msra.mxu2 %v895_v39  ;;  %v834_v12 = vld [vmem:[#allocation12 + $0x38] sm:$0xf]  ;;  %v946_v13 = vld [vmem:[#allocation12 + $0x40] sm:$0xf0]  ;;  %v815_v14 = vor.u32 %v942_v8, %v814_v7  ;;  %v819_v15 = vor.u32 %v941_v9, %v816_v10  ;;  %v802_v16 = vld [vmem:[#allocation12] sm:$0xf] }
  0x40   :  { %v939_v17 = vld [vmem:[#allocation12 + $0x8] sm:$0xf0]  ;;  %v938_v18 = vld [vmem:[#allocation12 + $0x4] sm:$0xf]  ;;  %v804_v19 = vld [vmem:[#allocation12 + $0xc] sm:$0xf0]  ;;  %v835_v20 = vor.u32 %v946_v13, %v834_v12 }
  0x41   :  { %554 = vmatpush.bf16.msra.mxu0 %v863_v37  ;;  %567 = vmatpush.bf16.msra.mxu1 %v867_v40  ;;  %v822_v21 = vld [vmem:[#allocation12 + $0x20] sm:$0xf]  ;;  %v943_v22 = vld [vmem:[#allocation12 + $0x28] sm:$0xf0]  ;;  %v803_v23 = vor.u32 %v939_v17, %v802_v16  ;;  %v807_v25 = vor.u32 %v938_v18, %v804_v19  ;;  %v810_v28 = vld [vmem:[#allocation12 + $0x8] sm:$0xf] }
  0x42   :  { %v1443_v24 = vld [vmem:[#allocation8] sm:$0xff]  ;;  %v823_v26 = vor.u32 %v943_v22, %v822_v21  ;;  %v940_v29 = vld [vmem:[#allocation12 + $0x10] sm:$0xf0]  ;;  %v933_v31 = vld [vmem:[%s1476_s9] sm:$0xff]  ;;  %s1316_s9 = smov [#allocation21]   ;;  %s1317_s0 = smov [#allocation20]  }
  0x43   :  { %579 = vmatpush.bf16.msra.mxu2 %v883_v46  ;;  %v391_v27 = vpack.c.bf16 %v1443_v24, %v1443_v24  ;;  %v811_v30 = vor.u32 %v940_v29, %v810_v28  ;;  %284 = vmatpush.bf16.msra.mxu3 %v933_v31  ;;  %v937_v37 = vld [vmem:[#allocation17] sm:$0xff]  ;;  %v968_v42 = vld [vmem:[#allocation18 + $0x30] sm:$0xff]  ;;  %v967_v44 = vld [vmem:[#allocation18 + $0x28] sm:$0xff]  ;;  %s738_s7 = sshll.u32 %s1316_s9, 4  ;;  %s727_s23 = sshll.u32 %s1317_s0, 4  ;;  %s739_s7 = int_to_ptr.vmem [resolvable:$true] %s738_s7  ;;  %s728_s23 = int_to_ptr.vmem [resolvable:$true] %s727_s23 }
  0x44   :  { %792 = vmatmul.msk.bf16.vlgmr.msrb.gmra.mxu0 %vm222_vm0, %v1435_v58  ;;  %793 = vmatmul.msk.bf16.vlgmr.msrb.gmra.mxu1 %vm222_vm0, %v1435_v58  ;;  %v969_v39 = vld [vmem:[#allocation18 + $0x38] sm:$0xff]  ;;  %v198_v43 = vld [vmem:[#allocation14] sm:$0x7]  ;;  %v963_v63 = vld [vmem:[#allocation18 + $0x8] sm:$0xff]  ;;  %s729_s2 = sshll.u32 %s1479_s12, 4  ;;  %s730_s2 = int_to_ptr.hbm [resolvable:$true] %s729_s2 }
  0x45   :  { %555 = vmatpush.bf16.msra.mxu0 %v851_v49  ;;  %568 = vmatpush.bf16.msra.mxu1 %v855_v50  ;;  %v200_v45 = vperm.slane %v198_v43, 0  ;;  %v201_v47 = vperm.slane %v198_v43, 1  ;;  %v966_v49 = vld [vmem:[#allocation18 + $0x20] sm:$0xff]  ;;  %v964_v61 = vld [vmem:[#allocation18 + $0x10] sm:$0xff] }
  0x46   :  { %779 = vmatmul.msk.bf16.vlgmr.msra.gmra.mxu3 %vm222_vm0, %v1427_v5  ;;  %v962_v2 = vld [vmem:[#allocation18] sm:$0xff] }
  0x47   :  { %580 = vmatpush.bf16.msra.mxu2 %v871_v55  ;;  %370 = vmatpush.bf16.msrb.mxu3 %v937_v37  ;;  %v965_v55 = vld [vmem:[#allocation18 + $0x18] sm:$0xff] }
  0x49   :  { %556 = vmatpush.bf16.msra.mxu0 %v839_v59  ;;  %569 = vmatpush.bf16.msra.mxu1 %v843_v60 }
  0x4a   :  { %794 = vmatmul.msk.bf16.vlgmr.msrb.gmra.mxu2 %vm222_vm0, %v1435_v58 }
  0x4b   :  { %581 = vmatpush.bf16.msra.mxu2 %v859_v1  ;;  %706 = vmatpush.bf16.msra.mxu3 %v969_v39 }
  0x4d   :  { %557 = vmatpush.bf16.msra.mxu0 %v827_v4  ;;  %570 = vmatpush.bf16.msra.mxu1 %v831_v6 }
  0x4f   :  { %582 = vmatpush.bf16.msra.mxu2 %v847_v11  ;;  %707 = vmatpush.bf16.msra.mxu3 %v968_v42 }
  0x51   :  { %558 = vmatpush.bf16.msra.mxu0 %v815_v14  ;;  %571 = vmatpush.bf16.msra.mxu1 %v819_v15  ;;  %v202_v14 = vperm.slane %v198_v43, 2  ;;  %v986_v15 = vld [vmem:[#allocation15] ss:$0 sm:$0xff] }
  0x53   :  { %583 = vmatpush.bf16.msra.mxu2 %v835_v20  ;;  %708 = vmatpush.bf16.msra.mxu3 %v967_v44 }
  0x55   :  { %559 = vmatpush.bf16.msra.mxu0 %v803_v23  ;;  %572 = vmatpush.bf16.msra.mxu1 %v807_v25 }
  0x56   :  { %799 = vmatmul.msk.bf16.vlgmr.msrb.gmra.mxu3 %vm222_vm0, %v1435_v58 }
  0x57   :  { %584 = vmatpush.bf16.msra.mxu2 %v823_v26  ;;  %709 = vmatpush.bf16.msra.mxu3 %v966_v49 }
  0x58   :  { %560 = vmatmul.bf16.vlgmr.msra.gmra.mxu0 %v391_v27  ;;  %573 = vmatmul.bf16.vlgmr.msra.gmra.mxu1 %v391_v27 }
  0x5b   :  { %585 = vmatpush.bf16.msra.mxu2 %v811_v30  ;;  %710 = vmatpush.bf16.msra.mxu3 %v965_v55 }
  0x5e   :  { %586 = vmatmul.bf16.vlgmr.msra.gmra.mxu2 %v391_v27 }
  0x5f   :  { %711 = vmatpush.bf16.msra.mxu3 %v964_v61 }
  0x63   :  { %712 = vmatpush.bf16.msra.mxu3 %v963_v63 }
  0x67   :  { %713 = vmatpush.bf16.msra.mxu3 %v962_v2 }
  0xb1   :  { %v235_v32 = vpop.f32.mrf.mxu0  ;;  %v248_v33 = vpop.f32.mrf.mxu1 }
  0xb2   :  { %v236_v50 = vadd.f32 %v235_v32, %v200_v45  ;;  %v249_v51 = vadd.f32 %v248_v33, %v201_v47 }
  0xb9   :  { %v237_v34 = vpop.f32.mrf.mxu0  ;;  %v250_v35 = vpop.f32.mrf.mxu1 }
  0xbd   :  { %v1452_v36 = vpop.f32.mrf.mxu2 }
  0xbe   :  { %v262_v22 = vadd.f32 %v1452_v36, %v202_v14 }
  0xc1   :  { %v322_v38 = vpop.f32.mrf.mxu0  ;;  %v335_v40 = vpop.f32.mrf.mxu1 }
  0xc2   :  { %v388_v52 = vadd.f32 %v322_v38, %v236_v50  ;;  %v389_v53 = vadd.f32 %v335_v40, %v249_v51 }
  0xc5   :  { %v263_v41 = vpop.f32.mrf.mxu2 }
  0xc9   :  { %v324_v5 = vpop.f32.mrf.mxu0  ;;  %v337_v46 = vpop.f32.mrf.mxu1 }
  0xca   :  { %v286_v5 = vpop.f32.mrf.mxu3 }
  0xcd   :  { %v348_v48 = vpop.f32.mrf.mxu2 }
  0xce   :  { %v390_v30 = vadd.f32 %v348_v48, %v262_v22 }
  0xd2   :  { %v288_v44 = vpop.f32.mrf.mxu3 }
  0xd5   :  { %v561_v54 = vpop.f32.mrf.mxu0  ;;  %v574_v57 = vpop.f32.mrf.mxu1 }
  0xd6   :  { %v591_v56 = vadd.f32 %v561_v54, %v388_v52  ;;  %v611_v58 = vadd.f32 %v574_v57, %v389_v53  ;;  %v350_v60 = vpop.f32.mrf.mxu2 }
  0xd8   :  { %v896_v59 = vmul.f32 -1.442695, %v591_v56  ;;  %v897_v62 = vmul.f32 -1.442695, %v611_v58 }
  0xda   :  { %988 = vpow2.f32 %v896_v59  ;;  %v372_v45 = vpop.f32.mrf.mxu3 }
  0xdb   :  { %990 = vpow2.f32 %v897_v62 }
  0xdd   :  { %v563_v0 = vpop.f32.mrf.mxu0  ;;  %v576_v1 = vpop.f32.mrf.mxu1 }
  0xe0   :  { %v989_v3 = vpop.eup %988 }
  0xe1   :  { %v991_v4 = vpop.eup %990  ;;  %v595_v6 = vadd.f32 1.0, %v989_v3  ;;  %v587_v7 = vpop.f32.mrf.mxu2 }
  0xe2   :  { %v615_v8 = vadd.f32 1.0, %v991_v4  ;;  %v631_v25 = vadd.f32 %v986_v15, %v587_v7  ;;  %v374_v46 = vpop.f32.mrf.mxu3 }
  0xe3   :  { %992 = vrcp.f32 %v595_v6  ;;  %v607_v18 = vand.u32 2147483648, %v595_v6  ;;  %v605_v20 = vand.u32 2147483647, %v595_v6  ;;  %vm601_vm2 = vweird.f32 %v595_v6 }
  0xe4   :  { %994 = vrcp.f32 %v615_v8  ;;  %v627_v31 = vand.u32 2147483648, %v615_v8  ;;  %vm621_vm6 = vweird.f32 %v615_v8  ;;  %v625_v33 = vand.u32 2147483647, %v615_v8 }
  0xe5   :  { %v608_v26 = vor.u32 1.1754944e-38, %v607_v18  ;;  %vm606_vm4 = vcmp.eq.f32.partialorder %v605_v20, 8.507059e+37 }
  0xe6   :  { %v628_v37 = vor.u32 1.1754944e-38, %v627_v31  ;;  %vm626_vm8 = vcmp.eq.f32.partialorder %v625_v33, 8.507059e+37 }
  0xe9   :  { %v993_v9 = vpop.eup %992  ;;  %v589_v10 = vpop.f32.mrf.mxu2 }
  0xea   :  { %v995_v11 = vpop.eup %994  ;;  %v597_v12 = vmul.f32 %v993_v9, %v595_v6  ;;  %vm602_vm1 = vweird.f32 %v993_v9 }
  0xeb   :  { %v617_v13 = vmul.f32 %v995_v11, %v615_v8  ;;  %vm603_vm3 = vmor %vm601_vm2, %vm602_vm1  ;;  %vm622_vm5 = vweird.f32 %v995_v11 }
  0xec   :  { %v598_v16 = vsub.f32 1.0, %v597_v12  ;;  %vm623_vm7 = vmor %vm621_vm6, %vm622_vm5 }
  0xed   :  { %v618_v17 = vsub.f32 1.0, %v617_v13 }
  0xee   :  { %v599_v19 = vmul.f32 %v993_v9, %v598_v16 }
  0xef   :  { %v619_v21 = vmul.f32 %v995_v11, %v618_v17 }
  0xf0   :  { %v600_v23 = vadd.f32 %v993_v9, %v599_v19 }
  0xf1   :  { %v620_v29 = vadd.f32 %v995_v11, %v619_v21 }
  0xf2   :  { %v604_v27 = vsel %vm603_vm3, %v993_v9, %v600_v23 }
  0xf3   :  { %v609_v28 = vsel %vm606_vm4, %v608_v26, %v604_v27  ;;  %v624_v35 = vsel %vm623_vm7, %v995_v11, %v620_v29 }
  0xf4   :  { %v632_v32 = vmul.f32 %v631_v25, %v609_v28  ;;  %v629_v36 = vsel %vm626_vm8, %v628_v37, %v624_v35 }
  0xf5   :  { %v635_v38 = vsub.f32 1.0, %v629_v36  ;;  %v637_v41 = vmul.f32 %v629_v36, %v1443_v24  ;;  %v987_v24 = vld [vmem:[%s1478_s11] ss:$0 sm:$0xff] }
  0xf6   :  { %v633_v34 = vadd.f32 %v632_v32, %v390_v30  ;;  %v287_v47 = vadd.f32 %v987_v24, %v286_v5 }
  0xf8   :  { %996 = vtanh.f32 %v633_v34  ;;  %v640_v48 = vadd.f32 %v372_v45, %v287_v47 }
  0xfe   :  { %v997_v39 = vpop.eup %996 }
  0xff   :  { %v636_v40 = vmul.f32 %v997_v39, %v635_v38 }
 0x101   :  { %v638_v42 = vadd.f32 %v637_v41, %v636_v40 }
 0x103   :  { %v641_v43 = vpack.c.bf16 %v638_v42, %v638_v42  ;;  %721 = vst [vmem:[#allocation21] sm:$0xff] %v638_v42 }
 0x104   :  { %743 = dma.vmem_to_hbm [thread:$0]  %s739_s7, 128, %s741_s20, [#allocation22]  }
 0x105   :  { %714 = vmatmul.bf16.vlgmr.msra.gmra.mxu3 %v641_v43 }
 0x188   :  { %v715_v49 = vpop.f32.mrf.mxu3 }
 0x189   :  { %v719_v50 = vadd.f32 %v715_v49, %v640_v48 }
 0x18b   :  { %720 = vst [vmem:[#allocation20] sm:$0xff] %v719_v50 }
 0x18c   :  { %732 = dma.vmem_to_hbm [thread:$0]  %s728_s23, 128, %s730_s2, [#allocation5]  }
 0x190   :  { %v717_v51 = vpop.f32.mrf.mxu3 }
 0x191   :  { %1298 = dma.done.wait [#allocation5], 128  }
 0x192   :  { %1299 = vsyncadd [#allocation5], 4294967168 }
 0x193   :  { %1300 = dma.done.wait [#allocation22], 128  }
 0x194   :  { %1301 = vsyncadd [#allocation22], 4294967168 }
 0x195   :  { %752 = vsyncpa [#allocation4], 1 }
 0x196   :  { %753 = vsyncpa [#allocation7], 1 }
 0x197   :  { %754 = vsyncpa [#allocation10], 1 }
 0x198   :  { %755 = vsyncpa [#allocation13], 1 }
 0x199   :  { %756 = vsyncpa [#allocation16], 1 }
 0x19a   :  { %757 = vsyncpa [#allocation19], 1 }
 0x19b   :  { %758 = vsyncpa [#allocation5], 1 }
 0x19c   :  { %759 = vsyncpa [#allocation22], 1 }

</bundles_post_ra>
